<compile_context>
chip_gen: v7x
topology: tpu7x:2x2x1
jax: 0.10.0
libtpu: 0.0.40
codegen_flags: <defaults>
</compile_context>

<pallas_src>
import functools

import numpy as np
import jax
import jax.numpy as jnp
from jax.experimental import pallas as pl
from jax.experimental.pallas import tpu as pltpu


MAX_TILE_B = 2048   # batch rows per grid step (multiple of 128 when gridded)


# ----------------------------------------------------------------------------
# Kernel: fused 2-hidden-layer MLP with fused (mean | std) head.
# Output block is stored transposed, (2A, tile_b), so the last dim is lane-dense.
# ----------------------------------------------------------------------------
def policy_net_kernel(x_ref, w1_ref, b1_ref, w2_ref, b2_ref, wh_ref, bh_ref,
                      out_ref, *, action_dim):
    x = x_ref[...]                                           # f32 (tile_b, S)

    # fc1 + ReLU
    h1 = jnp.dot(x, w1_ref[...], preferred_element_type=jnp.float32)
    h1 = jnp.maximum(h1 + b1_ref[...], 0.0)

    # fc2 + ReLU
    h2 = jnp.dot(h1, w2_ref[...], preferred_element_type=jnp.float32)
    h2 = jnp.maximum(h2 + b2_ref[...], 0.0)

    # fused heads: columns [0, A) = mean, [A, 2A) = log_std
    heads = jnp.dot(h2, wh_ref[...], preferred_element_type=jnp.float32)
    heads = heads + bh_ref[...]

    # exp() only on the log_std half (lane-index mask avoids sub-lane slicing).
    col = jax.lax.broadcasted_iota(jnp.int32, heads.shape, 1)
    fused = jnp.where(col < action_dim, heads, jnp.exp(heads))

    # Lane-dense store: (tile_b, 2A) -> (2A, tile_b), last dim multiple of 128.
    out_ref[...] = fused.T.astype(out_ref.dtype)


def _round_up(x, m):
    return ((x + m - 1) // m) * m


def policy_network_forward(state, params, *, max_tile_b=MAX_TILE_B):
    """state: [B, state_dim] f32 -> (mean, std): each [B, action_dim] f32."""
    w1, b1, w2, b2, wm, bm, ws, bs = params
    B, S = state.shape
    H = w1.shape[1]
    A = wm.shape[1]

    # Fuse the two heads into one weight / bias (done once per call; tiny).
    wh = jnp.concatenate([wm, ws], axis=1)        # (H, 2A)
    bh = jnp.concatenate([bm, bs], axis=1)        # (1, 2A)

    # Batch tiling: single block for small B; otherwise pick tile_b so the
    # padded remainder is < tile_b (no full extra pad pass over the state).
    if B <= max_tile_b:
        tile_b = _round_up(B, 8)                  # single block == full array
    else:
        n_blocks = pl.cdiv(B, max_tile_b)
        tile_b = _round_up(pl.cdiv(B, n_blocks), 128)   # lane-dense out blocks
    B_pad = _round_up(B, tile_b)
    if B_pad != B:
        state = jnp.pad(state, ((0, B_pad - B), (0, 0)))

    grid = (B_pad // tile_b,)

    def resident(a):                              # VMEM-resident across steps
        n = a.ndim
        return pl.BlockSpec(a.shape, lambda i, n=n: (0,) * n)

    cost = pl.CostEstimate(
        flops=2 * B_pad * (S * H + H * H + 2 * H * A),
        transcendentals=B_pad * 2 * A,            # exp computed, half selected
        bytes_accessed=4 * (B_pad * S                          # state (f32)
                            + S * H + H * H + 2 * H * A        # weights
                            + 2 * H + 2 * A                    # biases
                            + 2 * A * B_pad),                  # fused output
    )

    out = pl.pallas_call(
        functools.partial(policy_net_kernel, action_dim=A),
        out_shape=jax.ShapeDtypeStruct((2 * A, B_pad), jnp.float32),
        grid=grid,
        in_specs=[pl.BlockSpec((tile_b, S), lambda i: (i, 0)),
                  resident(w1), resident(b1),
                  resident(w2), resident(b2),
                  resident(wh), resident(bh)],
        out_specs=pl.BlockSpec((2 * A, tile_b), lambda i: (0, i)),
        compiler_params=pltpu.CompilerParams(
            dimension_semantics=("parallel",)),
        cost_estimate=cost,
    )(state, w1, b1, w2, b2, wh, bh)

    out_t = out.T[:B]                             # layout plumbing in wrapper
    return out_t[:, :A], out_t[:, A:]


# ----------------------------------------------------------------------------
# Deterministic parameter init mirroring the PyTorch module:
#   nn.init.orthogonal_(weight, gain)  gains: sqrt(2), sqrt(2), sqrt(.01)x2
#   default nn.Linear bias init: U(-1/sqrt(fan_in), 1/sqrt(fan_in))
# Weights are returned pre-transposed to [in_dim, out_dim] for x @ W.
# ----------------------------------------------------------------------------
def orthogonal_init(key, out_dim, in_dim, gain):
    flat = jax.random.normal(key, (out_dim, in_dim), dtype=jnp.float32)
    transposed = out_dim < in_dim
    if transposed:
        flat = flat.T
    q, r = jnp.linalg.qr(flat)
    q = q * jnp.sign(jnp.diag(r))
    if transposed:
        q = q.T
    return gain * q                               # [out_dim, in_dim]


def init_params(key, state_dim, action_dim, hidden):
    k1, k2, k3, k4, kb1, kb2, kb3, kb4 = jax.random.split(key, 8)

    w1 = orthogonal_init(k1, hidden, state_dim, np.sqrt(2.0))     # [H, S]
    w2 = orthogonal_init(k2, hidden, hidden, np.sqrt(2.0))        # [H, H]
    wm = orthogonal_init(k3, action_dim, hidden, np.sqrt(0.01))   # [A, H]
    ws = orthogonal_init(k4, action_dim, hidden, np.sqrt(0.01))   # [A, H]

    def bias(k, fan_in, n):
        bound = 1.0 / np.sqrt(fan_in)
        return jax.random.uniform(k, (1, n), jnp.float32, -bound, bound)

    b1 = bias(kb1, state_dim, hidden)
    b2 = bias(kb2, hidden, hidden)
    bm = bias(kb3, hidden, action_dim)
    bs = bias(kb4, hidden, action_dim)

    # transpose weights to [in, out] for x @ W inside the kernel
    return (w1.T, b1, w2.T, b2, wm.T, bm, ws.T, bs)


def reference_forward(state, params):
    """Pure-JAX f32 reference (same math as the PyTorch module)."""
    w1, b1, w2, b2, wm, bm, ws, bs = params
    h1 = jnp.maximum(jnp.dot(state, w1, preferred_element_type=jnp.float32) + b1, 0.0)
    h2 = jnp.maximum(jnp.dot(h1, w2, preferred_element_type=jnp.float32) + b2, 0.0)
    mean = jnp.dot(h2, wm, preferred_element_type=jnp.float32) + bm
    log_std = jnp.dot(h2, ws, preferred_element_type=jnp.float32) + bs
    return mean, jnp.exp(log_std)


def _check(state, params, **kw):
    mean, std = policy_network_forward(state, params, **kw)
    mean = jax.block_until_ready(mean)
    std = jax.block_until_ready(std)
    ref_mean, ref_std = reference_forward(state, params)
    np.testing.assert_allclose(np.asarray(mean), np.asarray(ref_mean),
                               rtol=1e-2, atol=1e-2)
    np.testing.assert_allclose(np.asarray(std), np.asarray(ref_std),
                               rtol=1e-2, atol=1e-2)
    assert mean.shape == ref_mean.shape and std.shape == ref_std.shape
    assert bool(jnp.all(std > 0.0))


if __name__ == "__main__":
    STATE_DIM = 8
    ACTION_DIM = 4
    HIDDEN_LAYER_SIZE = 32
    BATCH = 8

    key = jax.random.PRNGKey(0)
    k_params, k_state, k_state2 = jax.random.split(key, 3)

    params = init_params(k_params, STATE_DIM, ACTION_DIM, HIDDEN_LAYER_SIZE)

    # Small single-block case (inference-style batch).
    state = jax.random.normal(k_state, (BATCH, STATE_DIM), dtype=jnp.float32)
    _check(state, params)

    # Multi-block gridded case with a ragged last tile (exercises padding path).
    state2 = jax.random.normal(k_state2, (300, STATE_DIM), dtype=jnp.float32)
    _check(state2, params, max_tile_b=128)

    print("KERNEL_OK")
</pallas_src>

<mosaic_0001>
module attributes {stable_mosaic.version = 11 : i64} {
  func.func @policy_net_kernel(%arg0: i32, %arg1: memref<8x8xf32, #tpu.memory_space<vmem>>, %arg2: memref<8x32xf32, #tpu.memory_space<vmem>>, %arg3: memref<1x32xf32, #tpu.memory_space<vmem>>, %arg4: memref<32x32xf32, #tpu.memory_space<vmem>>, %arg5: memref<1x32xf32, #tpu.memory_space<vmem>>, %arg6: memref<32x8xf32, #tpu.memory_space<vmem>>, %arg7: memref<1x8xf32, #tpu.memory_space<vmem>>, %arg8: memref<8x8xf32, #tpu.memory_space<vmem>>) attributes {dimension_semantics = [#tpu.dimension_semantics<parallel>], iteration_bounds = array<i64: 1>, scalar_prefetch = 0 : i64, scratch_operands = 0 : i64, tpu.core_type = #tpu.core_type<tc>, window_params = [{transform_indices = @transform_0, window_bounds = array<i64: 8, 8>}, {pipeline_mode = #tpu.pipeline_mode<synchronous>, transform_indices = @transform_1, window_bounds = array<i64: 8, 32>}, {pipeline_mode = #tpu.pipeline_mode<synchronous>, transform_indices = @transform_2, window_bounds = array<i64: 1, 32>}, {pipeline_mode = #tpu.pipeline_mode<synchronous>, transform_indices = @transform_3, window_bounds = array<i64: 32, 32>}, {pipeline_mode = #tpu.pipeline_mode<synchronous>, transform_indices = @transform_4, window_bounds = array<i64: 1, 32>}, {pipeline_mode = #tpu.pipeline_mode<synchronous>, transform_indices = @transform_5, window_bounds = array<i64: 32, 8>}, {pipeline_mode = #tpu.pipeline_mode<synchronous>, transform_indices = @transform_6, window_bounds = array<i64: 1, 8>}, {transform_indices = @transform_7, window_bounds = array<i64: 8, 8>}]} {
    %c0 = arith.constant 0 : index
    %c0_0 = arith.constant 0 : index
    %0 = vector.load %arg1[%c0, %c0_0] : memref<8x8xf32, #tpu.memory_space<vmem>>, vector<8x8xf32>
    %c0_1 = arith.constant 0 : index
    %c0_2 = arith.constant 0 : index
    %1 = vector.load %arg2[%c0_1, %c0_2] : memref<8x32xf32, #tpu.memory_space<vmem>>, vector<8x32xf32>
    %cst = arith.constant dense<0.000000e+00> : vector<8x32xf32>
    %2 = tpu.matmul %0, %1, %cst {dimension_numbers = #tpu.dot_dimension_numbers<[1], [0], [0], [1], [0, 0, 1, 1], [], []>} : vector<8x8xf32>, vector<8x32xf32>, vector<8x32xf32> -> vector<8x32xf32>
    %c0_3 = arith.constant 0 : index
    %c0_4 = arith.constant 0 : index
    %3 = vector.load %arg3[%c0_3, %c0_4] : memref<1x32xf32, #tpu.memory_space<vmem>>, vector<1x32xf32>
    %4 = vector.broadcast %3 : vector<1x32xf32> to vector<8x32xf32>
    %5 = arith.addf %2, %4 : vector<8x32xf32>
    %cst_5 = arith.constant 0.000000e+00 : f32
    %6 = vector.broadcast %cst_5 : f32 to vector<8x32xf32>
    %7 = arith.maximumf %5, %6 : vector<8x32xf32>
    %c0_6 = arith.constant 0 : index
    %c0_7 = arith.constant 0 : index
    %8 = vector.load %arg4[%c0_6, %c0_7] : memref<32x32xf32, #tpu.memory_space<vmem>>, vector<32x32xf32>
    %cst_8 = arith.constant dense<0.000000e+00> : vector<8x32xf32>
    %9 = tpu.matmul %7, %8, %cst_8 {dimension_numbers = #tpu.dot_dimension_numbers<[1], [0], [0], [1], [0, 0, 1, 1], [], []>} : vector<8x32xf32>, vector<32x32xf32>, vector<8x32xf32> -> vector<8x32xf32>
    %c0_9 = arith.constant 0 : index
    %c0_10 = arith.constant 0 : index
    %10 = vector.load %arg5[%c0_9, %c0_10] : memref<1x32xf32, #tpu.memory_space<vmem>>, vector<1x32xf32>
    %11 = vector.broadcast %10 : vector<1x32xf32> to vector<8x32xf32>
    %12 = arith.addf %9, %11 : vector<8x32xf32>
    %cst_11 = arith.constant 0.000000e+00 : f32
    %13 = vector.broadcast %cst_11 : f32 to vector<8x32xf32>
    %14 = arith.maximumf %12, %13 : vector<8x32xf32>
    %c0_12 = arith.constant 0 : index
    %c0_13 = arith.constant 0 : index
    %15 = vector.load %arg6[%c0_12, %c0_13] : memref<32x8xf32, #tpu.memory_space<vmem>>, vector<32x8xf32>
    %cst_14 = arith.constant dense<0.000000e+00> : vector<8x8xf32>
    %16 = tpu.matmul %14, %15, %cst_14 {dimension_numbers = #tpu.dot_dimension_numbers<[1], [0], [0], [1], [0, 0, 1, 1], [], []>} : vector<8x32xf32>, vector<32x8xf32>, vector<8x8xf32> -> vector<8x8xf32>
    %c0_15 = arith.constant 0 : index
    %c0_16 = arith.constant 0 : index
    %17 = vector.load %arg7[%c0_15, %c0_16] : memref<1x8xf32, #tpu.memory_space<vmem>>, vector<1x8xf32>
    %18 = vector.broadcast %17 : vector<1x8xf32> to vector<8x8xf32>
    %19 = arith.addf %16, %18 : vector<8x8xf32>
    %20 = tpu.iota {dimensions = array<i32: 1>} : vector<8x8xi32>
    %c4_i32 = arith.constant 4 : i32
    %21 = vector.broadcast %c4_i32 : i32 to vector<8x8xi32>
    %22 = arith.cmpi slt, %20, %21 : vector<8x8xi32>
    %23 = math.exp %19 : vector<8x8xf32>
    %24 = arith.select %22, %19, %23 : vector<8x8xi1>, vector<8x8xf32>
    %25 = tpu.transpose %24, [1, 0] : vector<8x8xf32> -> vector<8x8xf32>
    %c0_17 = arith.constant 0 : index
    %c0_18 = arith.constant 0 : index
    %26 = vector.load %arg8[%c0_17, %c0_18] : memref<8x8xf32, #tpu.memory_space<vmem>>, vector<8x8xf32>
    tpu.vector_store %arg8[%c0_17, %c0_18], %25 {strides = array<i32>} : memref<8x8xf32, #tpu.memory_space<vmem>>, vector<8x8xf32>,
    return
  }
  func.func @transform_0(%arg0: i32) -> (i32, i32) {
    %c0_i32 = arith.constant 0 : i32
    %c0_i32_0 = arith.constant 0 : i32
    return %arg0, %c0_i32 : i32, i32
  }
  func.func @transform_1(%arg0: i32) -> (i32, i32) {
    %c0_i32 = arith.constant 0 : i32
    %c0_i32_0 = arith.constant 0 : i32
    %c0_i32_1 = arith.constant 0 : i32
    return %c0_i32, %c0_i32_0 : i32, i32
  }
  func.func @transform_2(%arg0: i32) -> (i32, i32) {
    %c0_i32 = arith.constant 0 : i32
    %c0_i32_0 = arith.constant 0 : i32
    %c0_i32_1 = arith.constant 0 : i32
    return %c0_i32, %c0_i32_0 : i32, i32
  }
  func.func @transform_3(%arg0: i32) -> (i32, i32) {
    %c0_i32 = arith.constant 0 : i32
    %c0_i32_0 = arith.constant 0 : i32
    %c0_i32_1 = arith.constant 0 : i32
    return %c0_i32, %c0_i32_0 : i32, i32
  }
  func.func @transform_4(%arg0: i32) -> (i32, i32) {
    %c0_i32 = arith.constant 0 : i32
    %c0_i32_0 = arith.constant 0 : i32
    %c0_i32_1 = arith.constant 0 : i32
    return %c0_i32, %c0_i32_0 : i32, i32
  }
  func.func @transform_5(%arg0: i32) -> (i32, i32) {
    %c0_i32 = arith.constant 0 : i32
    %c0_i32_0 = arith.constant 0 : i32
    %c0_i32_1 = arith.constant 0 : i32
    return %c0_i32, %c0_i32_0 : i32, i32
  }
  func.func @transform_6(%arg0: i32) -> (i32, i32) {
    %c0_i32 = arith.constant 0 : i32
    %c0_i32_0 = arith.constant 0 : i32
    %c0_i32_1 = arith.constant 0 : i32
    return %c0_i32, %c0_i32_0 : i32, i32
  }
  func.func @transform_7(%arg0: i32) -> (i32, i32) {
    %c0_i32 = arith.constant 0 : i32
    %c0_i32_0 = arith.constant 0 : i32
    return %c0_i32, %arg0 : i32, i32
  }
}

</mosaic_0001>

<bundles_post_ra>
// kernel: tpu_custom_call.1
= control target key start
LH: loop header
LB: loop body
LE: loop exit
PB: predicated region body
PF: predicated region fallthrough
CT: control target
= control target key end

     0   :  { %12 = vsyncpa [#allocation3], 0  ;;  %s566_s0 = inlined_call_operand.vmem [shape: f32[8,8], index: 0, kind: input, shape index: {}]   ;;  %s567_s1 = inlined_call_operand.hbm [shape: f32[8,32], index: 1, kind: input, shape index: {}]   ;;  %s568_s2 = inlined_call_operand.vmem [shape: f32[1,32], index: 2, kind: input, shape index: {}]   ;;  %s569_s3 = inlined_call_operand.vmem [shape: f32[32,32], index: 3, kind: input, shape index: {}]   ;;  %s570_s4 = inlined_call_operand.vmem [shape: f32[1,32], index: 4, kind: input, shape index: {}]   ;;  %s571_s5 = inlined_call_operand.vmem [shape: f32[32,8], index: 5, kind: input, shape index: {}]   ;;  %s572_s6 = inlined_call_operand.vmem [shape: f32[1,8], index: 6, kind: input, shape index: {}]   ;;  %s573_s7 = inlined_call_operand.hbm [shape: f32[8,8], index: 7, kind: output, shape index: {}]  }
   0x1   :  { %13 = vsyncpa [#allocation4], 0  ;;  %s459_s24 = smov [#allocation2]   ;;  %s411_s28 = scalar_lea.hbm %s567_s1, 128 }
   0x2   :  { %s22_s25 = sshll.u32 %s459_s24, 4  ;;  %p412_p0 = scmp.ne.s32.totalorder %s567_s1, %s411_s28  ;;  %s23_s25 = int_to_ptr.vmem [resolvable:$true] %s22_s25 }
   0x3   :  { %p415_p1 = scmp.lt.u32.totalorder %s411_s28, %s567_s1 }
   0x5   :  { %p417_p2 = pnand %p415_p1, %p412_p0 }
   0x7   :  { %420 = shalt.err (!%p417_p2)
}
   0x8   :  { %s421_s10 = scalar_lea.vmem %s23_s25, 128  ;;  %p426_p4 = scmp.lt.s32.totalorder %s23_s25, %s23_s25 }
   0x9   :  { %p422_p3 = scmp.ne.s32.totalorder %s23_s25, %s421_s10  ;;  %p427_p5 = scmp.lt.s32.totalorder %s421_s10, %s421_s10 }
   0xb   :  { %p428_p6 = por %p427_p5, %p426_p4 }
   0xd   :  { %p429_p7 = pnand %p428_p6, %p422_p3 }
   0xf   :  { %432 = shalt.err (!%p429_p7)
}
  0x10   :  { %25 = dma.hbm_to_vmem [thread:$0]  %s567_s1, 128, %s23_s25, [#allocation3]  }
  0x11   :  { %455 = dma.done.wait [#allocation3], 128  }
  0x12   :  { %456 = vsyncadd [#allocation3], 4294967168  ;;  %v460_v0 = vmov 0.0   ;;  %vm461_vm0 = vmmov 0   ;;  %v462_v1 = vmov 0.0|0.0   ;;  %vm48_vm1 = vcmask 64512  }
  0x13   :  { %365 = vmatprep.subr.mxu0 %v460_v0  ;;  %367 = vmatprep.mubr.msk.f32.mxu0 %vm461_vm0, %v460_v0  ;;  %v40_v2 = vld [vmem:[#allocation2] sm:$0xff]  ;;  %v124_v5 = vld [vmem:[%s569_s3 + $0x8] sm:$0xff]  ;;  %v125_v7 = vld [vmem:[%s569_s3 + $0x10] sm:$0xff]  ;;  %vm134_vm2 = vcmask 261120   ;;  %v293_v31 = vlaneseq }
  0x14   :  { %392 = vmatprep.subr.bf16.mxu1 %v462_v1  ;;  %378 = vmatprep.mubr.msk.f32.mxu1 %vm461_vm0, %v460_v0  ;;  %v39_v3 = vld [vmem:[%s566_s0] sm:$0xff]  ;;  %v126_v8 = vld [vmem:[%s569_s3 + $0x18] sm:$0xff]  ;;  %v210_v11 = vld [vmem:[%s571_s5 + $0x8] sm:$0xff] }
  0x15   :  { %v123_v4 = vld [vmem:[%s569_s3] sm:$0xff]  ;;  %366 = vmatpush3.msra.mxu0 %v40_v2  ;;  %v396_v9 = vpack.c.bf16 %v126_v8, %v125_v7  ;;  %v211_v18 = vld [vmem:[%s571_s5 + $0x10] sm:$0xff]  ;;  %v212_v19 = vld [vmem:[%s571_s5 + $0x18] sm:$0xff]  ;;  %v294_v32 = vand.u32 127, %v293_v31 }
  0x16   :  { %368 = vmatmul.mubr.msk.f32.vlgmr.msra.gmra.mrb[0].mxu0 %vm48_vm1, %v39_v3  ;;  %v393_v6 = vpack.c.bf16 %v124_v5, %v123_v4  ;;  %398 = vmatprep.subr.bf16.mxu0 %v462_v1  ;;  %v209_v10 = vld [vmem:[%s571_s5] sm:$0xff]  ;;  %v402_v20 = vpack.c.bf16 %v212_v19, %v211_v18 }
  0x17   :  { %389 = vmatprep.mubr.msk.f32.mxu0 %vm461_vm0, %v460_v0  ;;  %v399_v12 = vpack.c.bf16 %v210_v11, %v209_v10  ;;  %v347_v13 = vld [vmem:[%s568_s2] ss:$0 sm:$0xff]  ;;  %vm295_vm3 = vcmp.lt.s32.totalorder %v294_v32, 4 }
  0x18   :  { %394 = vmatpush3.bf16.msra.mxu1 %v393_v6  ;;  %v349_v21 = vld [vmem:[%s570_s4] ss:$0 sm:$0xff]  ;;  %s463_s4 = smov [#allocation5]  }
  0x19   :  { %395 = vmatprep.subr.bf16.mxu1 %v462_v1  ;;  %400 = vmatpush3.bf16.msra.mxu0 %v399_v12  ;;  %v351_v26 = vld [vmem:[%s572_s6] ss:$0 sm:$0xff]  ;;  %s338_s5 = sshll.u32 %s463_s4, 4  ;;  %s339_s5 = int_to_ptr.vmem [resolvable:$true] %s338_s5 }
  0x1a   :  { %401 = vmatprep.subr.bf16.mxu0 %v462_v1  ;;  %s433_s10 = scalar_lea.vmem %s339_s5, 128  ;;  %p438_p9 = scmp.lt.s32.totalorder %s339_s5, %s339_s5 }
  0x1b   :  { %p434_p8 = scmp.ne.s32.totalorder %s339_s5, %s433_s10  ;;  %p439_p10 = scmp.lt.s32.totalorder %s433_s10, %s433_s10 }
  0x1c   :  { %397 = vmatpush3.bf16.msra.mxu1 %v396_v9 }
  0x1d   :  { %403 = vmatpush3.bf16.msra.mxu0 %v402_v20  ;;  %p440_p11 = por %p439_p10, %p438_p9 }
  0x1f   :  { %p441_p12 = pnand %p440_p11, %p434_p8 }
  0xe9   :  { %v118_v14 = vpop.f32.mrb[0].mxu0 }
  0xea   :  { %v119_v15 = vadd.f32 %v347_v13, %v118_v14  ;;  %v369_v16 = vpop.f32.mrb[1].mxu0 }
  0xec   :  { %v122_v17 = vmax.f32 %v119_v15, 0.0 }
  0xee   :  { %379 = vmatmul.mubr.msk.f32.vlgmr.msra.gmra.mrb[0].mxu1 %vm134_vm2, %v122_v17 }
 0x1c1   :  { %v204_v22 = vpop.f32.mrb[0].mxu1 }
 0x1c2   :  { %v205_v23 = vadd.f32 %v349_v21, %v204_v22  ;;  %v380_v24 = vpop.f32.mrb[1].mxu1 }
 0x1c4   :  { %v208_v25 = vmax.f32 %v205_v23, 0.0 }
 0x1c6   :  { %390 = vmatmul.mubr.msk.f32.vlgmr.msra.gmra.mrb[2].mxu0 %vm134_vm2, %v208_v25 }
 0x299   :  { %v289_v27 = vpop.f32.mrb[2].mxu0 }
 0x29a   :  { %v290_v28 = vadd.f32 %v351_v26, %v289_v27  ;;  %v391_v29 = vpop.f32.mrb[3].mxu0 }
 0x29c   :  { %v296_v30 = vmul.f32 1.442695, %v290_v28 }
 0x29e   :  { %409 = vpow2.f32 %v296_v30 }
 0x2a8   :  { %v410_v33 = vpop.eup %409 }
 0x2a9   :  { %v298_v34 = vsel %vm295_vm3, %v290_v28, %v410_v33 }
 0x2aa   :  { %299 = vxpose.xlu0.b32.start.end [1/1] (short) (narrow) %v298_v34, 8 }
 0x32a   :  { %v315_v35 = vpop.trf.xlu0 }
 0x32b   :  { %331 = vst.msk [vmem:[#allocation5] sm:$0xff] %vm48_vm1, %v315_v35 }
 0x32c   :  { %444 = shalt.err (!%p441_p12)
}
 0x32d   :  { %s445_s12 = scalar_lea.hbm %s573_s7, 128 }
 0x32e   :  { %p446_p13 = scmp.ne.s32.totalorder %s573_s7, %s445_s12  ;;  %p449_p0 = scmp.lt.u32.totalorder %s445_s12, %s573_s7 }
 0x330   :  { %p451_p1 = pnand %p449_p0, %p446_p13 }
 0x332   :  { %454 = shalt.err (!%p451_p1)
}
 0x333   :  { %341 = dma.vmem_to_hbm [thread:$0]  %s339_s5, 128, %s573_s7, [#allocation4]  }
 0x334   :  { %457 = dma.done.wait [#allocation4], 128  }
 0x335   :  { %458 = vsyncadd [#allocation4], 4294967168 }
 0x336   :  { %345 = vsyncpa [#allocation3], 1 }
 0x337   :  { %346 = vsyncpa [#allocation4], 1 }

</bundles_post_ra>
